<compile_context>
chip_gen: v7x
topology: tpu7x:2x2x1
jax: 0.10.0
libtpu: 0.0.40
codegen_flags: <defaults>
</compile_context>

<pallas_src>
import functools

import jax
import jax.numpy as jnp
from jax.experimental import pallas as pl
from jax.experimental.pallas import tpu as pltpu

_LANE = 128


def _round_up(x, m):
    return (x + m - 1) // m * m


# ---------------------------------------------------------------------------
# Hardware-derived VMEM budget (generation-aware)
# ---------------------------------------------------------------------------
def _vmem_capacity_bytes():
    try:
        return int(pltpu.get_tpu_info().vmem_capacity_bytes)
    except Exception:
        return 64 * 1024 * 1024  # conservative (v7x-sized) fallback


_VMEM_CAPACITY = _vmem_capacity_bytes()
# ~96 MiB on 128-MiB parts (v5e/v6e), ~48 MiB on 64-MiB parts (v7x).
_VMEM_LIMIT = int(min(_VMEM_CAPACITY * 3 // 4, 100 * 1024 * 1024))
_VMEM_BUDGET = int(max(_VMEM_LIMIT - 8 * 1024 * 1024, 16 * 1024 * 1024))

_BUFFERED_SINGLE_OK = None


def _single_buffer_supported():
    """Probe (once) whether pipeline_mode=pl.Buffered(1) lowers on this jax/backend."""
    global _BUFFERED_SINGLE_OK
    if _BUFFERED_SINGLE_OK is None:
        try:
            def _probe_kernel(a_ref, o_ref):
                o_ref[...] = a_ref[...]

            fn = pl.pallas_call(
                _probe_kernel,
                out_shape=jax.ShapeDtypeStruct((8, 128), jnp.float32),
                grid=(2,),
                in_specs=[pl.BlockSpec((8, 128), lambda i: (0, 0),
                                       pipeline_mode=pl.Buffered(1))],
                out_specs=pl.BlockSpec((8, 128), lambda i: (0, 0)),
            )
            jax.jit(fn).lower(jax.ShapeDtypeStruct((8, 128), jnp.float32)).compile()
            _BUFFERED_SINGLE_OK = True
        except Exception:
            _BUFFERED_SINGLE_OK = False
    return _BUFFERED_SINGLE_OK


# ---------------------------------------------------------------------------
# Kernel
# ---------------------------------------------------------------------------
def _mdn_kernel(x_ref, w_ref, b_ref, y_ref, *, n_mu, n_lv, eps, compute_dtype):
    # In-kernel downcast of activations (saves a separate HBM pre-pass).
    x = x_ref[...].astype(compute_dtype)
    # One fused MXU matmul over all 2C+1 projections; f32 accumulation + f32 bias.
    y = jnp.dot(x, w_ref[...], preferred_element_type=jnp.float32) + b_ref[...]
    # 128-aligned column splits -> tile-aligned stores into the single fused output.
    y_ref[:, :n_mu] = y[:, :n_mu].astype(y_ref.dtype)
    # 0.5 * logvar scale was folded into the weights/bias at prepare time.
    y_ref[:, n_mu:n_mu + n_lv] = (jnp.exp(y[:, n_mu:n_mu + n_lv]) + eps).astype(y_ref.dtype)
    y_ref[:, n_mu + n_lv:] = y[:, n_mu + n_lv:].astype(y_ref.dtype)


# ---------------------------------------------------------------------------
# One-time parameter fusion (hoisted out of the per-call path)
# ---------------------------------------------------------------------------
def prepare_mdn_params(params, *, compute_dtype=jnp.bfloat16):
    """Fuses all per-component Linear weights into one padded wide-matmul operand.

    params:
      w_mu, w_lv : (C, F_out, F_in)   (torch Linear.weight layout per component)
      b_mu, b_lv : (C, F_out)
      w_logits   : (C, F_in)
      b_logits   : (C,)
    Returns:
      w_cat : (F_in, N_total) compute_dtype   (0.5 folded into the logvar block)
      b_cat : (1, N_total)    float32
    """
    w_mu = jnp.asarray(params["w_mu"], jnp.float32)
    b_mu = jnp.asarray(params["b_mu"], jnp.float32)
    w_lv = jnp.asarray(params["w_lv"], jnp.float32)
    b_lv = jnp.asarray(params["b_lv"], jnp.float32)
    w_lg = jnp.asarray(params["w_logits"], jnp.float32)
    b_lg = jnp.asarray(params["b_logits"], jnp.float32)

    C, F_out, F_in = w_mu.shape
    n_mu = _round_up(F_out * C, _LANE)
    n_lv = n_mu
    n_lg = _round_up(C, _LANE)

    def cat_w(w):   # (C, F_out, F_in) -> (F_in, F_out*C), column index = f*C + k
        return jnp.transpose(w, (2, 1, 0)).reshape(F_in, F_out * C)

    def cat_b(b):   # (C, F_out) -> (1, F_out*C)
        return jnp.transpose(b, (1, 0)).reshape(1, F_out * C)

    def pad_cols(a, n):
        return jnp.pad(a, ((0, 0), (0, n - a.shape[1])))

    w_cat = jnp.concatenate(
        [pad_cols(cat_w(w_mu), n_mu),
         pad_cols(cat_w(0.5 * w_lv), n_lv),          # fold exp(0.5 * .) scale (exact)
         pad_cols(jnp.transpose(w_lg, (1, 0)), n_lg)],
        axis=1).astype(compute_dtype)
    b_cat = jnp.concatenate(
        [pad_cols(cat_b(b_mu), n_mu),
         pad_cols(cat_b(0.5 * b_lv), n_lv),
         pad_cols(b_lg.reshape(1, C), n_lg)],
        axis=1).astype(jnp.float32)
    return w_cat, b_cat


# ---------------------------------------------------------------------------
# Forward wrapper
# ---------------------------------------------------------------------------
@functools.partial(
    jax.jit,
    static_argnames=("out_features", "num_components", "eps", "squeeze_feature_dim",
                     "out_dtype", "max_block_rows", "single_buffer_weights"))
def _mdn_forward_impl(x, w_cat, b_cat, *, out_features, num_components, eps,
                      squeeze_feature_dim, out_dtype, max_block_rows,
                      single_buffer_weights):
    B, F_in = x.shape
    F_out, C = out_features, num_components
    n_mu = _round_up(F_out * C, _LANE)
    n_lv = n_mu
    n_lg = _round_up(C, _LANE)
    n_total = n_mu + n_lv + n_lg
    assert w_cat.shape == (F_in, n_total), (w_cat.shape, (F_in, n_total))
    assert b_cat.shape == (1, n_total)
    if squeeze_feature_dim:
        assert F_out == 1, "Can not squeeze feature dimension!"

    compute_dtype = w_cat.dtype
    c_item = jnp.dtype(compute_dtype).itemsize
    o_item = jnp.dtype(out_dtype).itemsize
    x_item = jnp.dtype(x.dtype).itemsize

    # --- VMEM budgeting: resident weights (+single-buffer when supported), streamed tiles.
    w_copies = 1 if single_buffer_weights else 2
    w_bytes = w_copies * (w_cat.size * c_item + b_cat.size * 4)

    def tile_bytes(t):
        io = 2 * t * F_in * x_item + 2 * t * n_total * o_item     # double-buffered x/out tiles
        tmp = t * (F_in * c_item + n_total * 4 + n_lv * 4)        # in-kernel cast/y/exp temps
        return io + tmp

    min_rows = 16 if c_item == 2 else 8
    tm = min(max_block_rows, _round_up(B, min_rows))
    tm = max(min_rows, _round_up(tm, min_rows))
    while tm > min_rows and w_bytes + tile_bytes(tm) > _VMEM_BUDGET:
        tm = max(min_rows, _round_up(tm // 2, min_rows))
    # Prefer >= 2 grid steps so multi-TensorCore parts (v7x) can split the batch axis.
    while tm > min_rows and tm >= B:
        new_tm = max(min_rows, _round_up(tm // 2, min_rows))
        if new_tm == tm:
            break
        tm = new_tm

    grid = (pl.cdiv(B, tm),)

    kernel = functools.partial(_mdn_kernel, n_mu=n_mu, n_lv=n_lv, eps=eps,
                               compute_dtype=compute_dtype)

    resident_kwargs = dict(pipeline_mode=pl.Buffered(1)) if single_buffer_weights else {}

    flops = 2 * B * F_in * n_total
    bytes_accessed = (B * F_in * x_item
                      + w_cat.size * c_item + b_cat.size * 4
                      + B * n_total * o_item)

    y = pl.pallas_call(
        kernel,
        out_shape=jax.ShapeDtypeStruct((B, n_total), out_dtype),
        grid=grid,
        in_specs=[
            pl.BlockSpec((tm, F_in), lambda i: (i, 0)),                         # x: streamed
            pl.BlockSpec((F_in, n_total), lambda i: (0, 0), **resident_kwargs),  # W: resident
            pl.BlockSpec((1, n_total), lambda i: (0, 0), **resident_kwargs),     # b: resident
        ],
        out_specs=pl.BlockSpec((tm, n_total), lambda i: (i, 0)),                 # fused output
        compiler_params=pltpu.CompilerParams(
            dimension_semantics=("parallel",),
            vmem_limit_bytes=_VMEM_LIMIT,
        ),
        cost_estimate=pl.CostEstimate(
            flops=flops,
            transcendentals=B * n_lv,
            bytes_accessed=bytes_accessed,
        ),
    )(x, w_cat, b_cat)

    # 128-aligned splits of the fused output.
    mu = y[:, :F_out * C].reshape(B, F_out, C)
    sigma = y[:, n_mu:n_mu + F_out * C].reshape(B, F_out, C)
    logits = y[:, n_mu + n_lv:n_mu + n_lv + C]

    if squeeze_feature_dim:
        mu = mu.squeeze(-2)
        sigma = sigma.squeeze(-2)
    return logits, mu, sigma


def mdn_forward(x, w_cat, b_cat, *, out_features, num_components, eps=1e-4,
                squeeze_feature_dim=False, out_dtype=None, max_block_rows=1024):
    """Fused MDN forward. Returns (logits, mu, sigma) — the NormalMixture parameters."""
    out_dtype = jnp.dtype(out_dtype if out_dtype is not None else x.dtype)
    single = _single_buffer_supported()
    return _mdn_forward_impl(
        x, w_cat, b_cat,
        out_features=out_features, num_components=num_components, eps=eps,
        squeeze_feature_dim=squeeze_feature_dim, out_dtype=out_dtype,
        max_block_rows=max_block_rows, single_buffer_weights=single)


# ---------------------------------------------------------------------------
# Synthetic init + pure-JAX reference (mirrors the PyTorch module)
# ---------------------------------------------------------------------------
def init_params(key, in_features, out_features, num_components):
    """Matches the module's __init__ (mu: default Linear init, logvar: N(0,0.01)/0,
    logits: zeros)."""
    k_mu_w, k_mu_b, k_lv_w = jax.random.split(key, 3)
    bound = 1.0 / (in_features ** 0.5)
    w_mu = jax.random.uniform(
        k_mu_w, (num_components, out_features, in_features),
        minval=-bound, maxval=bound, dtype=jnp.float32)
    b_mu = jax.random.uniform(
        k_mu_b, (num_components, out_features),
        minval=-bound, maxval=bound, dtype=jnp.float32)
    w_lv = 0.01 * jax.random.normal(
        k_lv_w, (num_components, out_features, in_features), dtype=jnp.float32)
    b_lv = jnp.zeros((num_components, out_features), jnp.float32)
    w_logits = jnp.zeros((num_components, in_features), jnp.float32)
    b_logits = jnp.zeros((num_components,), jnp.float32)
    return dict(w_mu=w_mu, b_mu=b_mu, w_lv=w_lv, b_lv=b_lv,
                w_logits=w_logits, b_logits=b_logits)


def _reference(x, params, eps):
    """Pure-JAX f32 reference mirroring the PyTorch forward."""
    C = params["w_mu"].shape[0]
    mu = jnp.stack([x @ params["w_mu"][k].T + params["b_mu"][k] for k in range(C)], axis=-1)
    sigma = jnp.stack(
        [jnp.exp(0.5 * (x @ params["w_lv"][k].T + params["b_lv"][k])) for k in range(C)],
        axis=-1) + eps
    logits = x @ params["w_logits"].T + params["b_logits"]
    return logits, mu, sigma


if __name__ == "__main__":
    B, IN_FEATURES, OUT_FEATURES, NUM_COMPONENTS = 8, 32, 8, 4
    EPS = 1e-4

    key = jax.random.PRNGKey(0)
    k_x, k_p = jax.random.split(key)
    x = jax.random.normal(k_x, (B, IN_FEATURES), dtype=jnp.float32)
    params = init_params(k_p, IN_FEATURES, OUT_FEATURES, NUM_COMPONENTS)

    ref_logits, ref_mu, ref_sigma = _reference(x, params, EPS)

    # --- float32 compute path, f32 outputs: exact-precision check vs. the reference.
    w_cat_f32, b_cat_f32 = prepare_mdn_params(params, compute_dtype=jnp.float32)
    logits32, mu32, sigma32 = mdn_forward(
        x, w_cat_f32, b_cat_f32,
        out_features=OUT_FEATURES, num_components=NUM_COMPONENTS, eps=EPS)
    jax.block_until_ready((logits32, mu32, sigma32))
    assert logits32.shape == (B, NUM_COMPONENTS)
    assert mu32.shape == (B, OUT_FEATURES, NUM_COMPONENTS)
    assert sigma32.shape == (B, OUT_FEATURES, NUM_COMPONENTS)
    assert jnp.allclose(logits32, ref_logits, atol=1e-5)
    assert jnp.allclose(mu32, ref_mu, atol=1e-5)
    assert jnp.allclose(sigma32, ref_sigma, atol=1e-5)

    # --- bf16 compute path with bf16 outputs (performance default): looser tolerance.
    w_cat, b_cat = prepare_mdn_params(params)   # bf16 fused weights, prepared once
    logits, mu, sigma = mdn_forward(
        x, w_cat, b_cat,
        out_features=OUT_FEATURES, num_components=NUM_COMPONENTS, eps=EPS,
        out_dtype=jnp.bfloat16)
    jax.block_until_ready((logits, mu, sigma))
    assert logits.dtype == jnp.bfloat16 and mu.dtype == jnp.bfloat16
    assert jnp.allclose(logits.astype(jnp.float32), ref_logits, atol=3e-2, rtol=3e-2)
    assert jnp.allclose(mu.astype(jnp.float32), ref_mu, atol=3e-2, rtol=3e-2)
    assert jnp.allclose(sigma.astype(jnp.float32), ref_sigma, atol=3e-2, rtol=3e-2)

    print("KERNEL_OK")
</pallas_src>

<mosaic_0001>
module attributes {stable_mosaic.version = 11 : i64} {
  func.func @_mdn_kernel(%arg0: i32, %arg1: memref<8x32xf32, #tpu.memory_space<vmem>>, %arg2: memref<32x384xf32, #tpu.memory_space<vmem>>, %arg3: memref<1x384xf32, #tpu.memory_space<vmem>>, %arg4: memref<8x384xf32, #tpu.memory_space<vmem>>) attributes {dimension_semantics = [#tpu.dimension_semantics<parallel>], iteration_bounds = array<i64: 1>, scalar_prefetch = 0 : i64, scratch_operands = 0 : i64, tpu.core_type = #tpu.core_type<tc>, window_params = [{transform_indices = @transform_0, window_bounds = array<i64: 8, 32>}, {pipeline_mode = #tpu.pipeline_mode<synchronous>, transform_indices = @transform_1, window_bounds = array<i64: 32, 384>}, {pipeline_mode = #tpu.pipeline_mode<synchronous>, transform_indices = @transform_2, window_bounds = array<i64: 1, 384>}, {transform_indices = @transform_3, window_bounds = array<i64: 8, 384>}]} {
    %c0 = arith.constant 0 : index
    %c0_0 = arith.constant 0 : index
    %0 = vector.load %arg1[%c0, %c0_0] : memref<8x32xf32, #tpu.memory_space<vmem>>, vector<8x32xf32>
    %c0_1 = arith.constant 0 : index
    %c0_2 = arith.constant 0 : index
    %1 = vector.load %arg2[%c0_1, %c0_2] : memref<32x384xf32, #tpu.memory_space<vmem>>, vector<32x384xf32>
    %cst = arith.constant dense<0.000000e+00> : vector<8x384xf32>
    %2 = tpu.matmul %0, %1, %cst {dimension_numbers = #tpu.dot_dimension_numbers<[1], [0], [0], [1], [0, 0, 1, 1], [], []>} : vector<8x32xf32>, vector<32x384xf32>, vector<8x384xf32> -> vector<8x384xf32>
    %c0_3 = arith.constant 0 : index
    %c0_4 = arith.constant 0 : index
    %3 = vector.load %arg3[%c0_3, %c0_4] : memref<1x384xf32, #tpu.memory_space<vmem>>, vector<1x384xf32>
    %4 = vector.broadcast %3 : vector<1x384xf32> to vector<8x384xf32>
    %5 = arith.addf %2, %4 : vector<8x384xf32>
    %6 = vector.extract_strided_slice %5 {offsets = [0, 0], sizes = [8, 128], strides = [1, 1]} : vector<8x384xf32> to vector<8x128xf32>
    %c0_5 = arith.constant 0 : index
    %c0_6 = arith.constant 0 : index
    %7 = vector.load %arg4[%c0_5, %c0_6] : memref<8x384xf32, #tpu.memory_space<vmem>>, vector<8x128xf32>
    tpu.vector_store %arg4[%c0_5, %c0_6], %6 {strides = array<i32>} : memref<8x384xf32, #tpu.memory_space<vmem>>, vector<8x128xf32>,
    %8 = vector.extract_strided_slice %5 {offsets = [0, 128], sizes = [8, 128], strides = [1, 1]} : vector<8x384xf32> to vector<8x128xf32>
    %9 = math.exp %8 : vector<8x128xf32>
    %cst_7 = arith.constant 9.99999974E-5 : f32
    %10 = vector.broadcast %cst_7 : f32 to vector<8x128xf32>
    %11 = arith.addf %9, %10 : vector<8x128xf32>
    %c0_8 = arith.constant 0 : index
    %c128 = arith.constant 128 : index
    %12 = vector.load %arg4[%c0_8, %c128] : memref<8x384xf32, #tpu.memory_space<vmem>>, vector<8x128xf32>
    tpu.vector_store %arg4[%c0_8, %c128], %11 {strides = array<i32>} : memref<8x384xf32, #tpu.memory_space<vmem>>, vector<8x128xf32>,
    %13 = vector.extract_strided_slice %5 {offsets = [0, 256], sizes = [8, 128], strides = [1, 1]} : vector<8x384xf32> to vector<8x128xf32>
    %c0_9 = arith.constant 0 : index
    %c256 = arith.constant 256 : index
    %14 = vector.load %arg4[%c0_9, %c256] : memref<8x384xf32, #tpu.memory_space<vmem>>, vector<8x128xf32>
    tpu.vector_store %arg4[%c0_9, %c256], %13 {strides = array<i32>} : memref<8x384xf32, #tpu.memory_space<vmem>>, vector<8x128xf32>,
    return
  }
  func.func @transform_0(%arg0: i32) -> (i32, i32) {
    %c0_i32 = arith.constant 0 : i32
    %c0_i32_0 = arith.constant 0 : i32
    return %arg0, %c0_i32 : i32, i32
  }
  func.func @transform_1(%arg0: i32) -> (i32, i32) {
    %c0_i32 = arith.constant 0 : i32
    %c0_i32_0 = arith.constant 0 : i32
    %c0_i32_1 = arith.constant 0 : i32
    return %c0_i32, %c0_i32_0 : i32, i32
  }
  func.func @transform_2(%arg0: i32) -> (i32, i32) {
    %c0_i32 = arith.constant 0 : i32
    %c0_i32_0 = arith.constant 0 : i32
    %c0_i32_1 = arith.constant 0 : i32
    return %c0_i32, %c0_i32_0 : i32, i32
  }
  func.func @transform_3(%arg0: i32) -> (i32, i32) {
    %c0_i32 = arith.constant 0 : i32
    %c0_i32_0 = arith.constant 0 : i32
    return %arg0, %c0_i32 : i32, i32
  }
}

</mosaic_0001>

<bundles_post_ra>
// kernel: _mdn_forward_impl.1
= control target key start
LH: loop header
LB: loop body
LE: loop exit
PB: predicated region body
PF: predicated region fallthrough
CT: control target
= control target key end

     0   :  { %8 = vsyncpa [#allocation3], 0  ;;  %s386_s0 = inlined_call_operand.hbm [shape: f32[8,32], index: 0, kind: input, shape index: {}]   ;;  %s387_s1 = inlined_call_operand.hbm [shape: f32[32,384], index: 1, kind: input, shape index: {}]   ;;  %s388_s2 = inlined_call_operand.vmem [shape: f32[1,384], index: 2, kind: input, shape index: {}]   ;;  %s389_s3 = inlined_call_operand.vmem [shape: f32[8,384], index: 3, kind: output, shape index: {}]  }
   0x1   :  { %9 = vsyncpa [#allocation5], 0  ;;  %s316_s12 = smov [#allocation2]   ;;  %s317_s14 = smov [#allocation4]  }
   0x2   :  { %s16_s13 = sshll.u32 %s316_s12, 4  ;;  %s25_s15 = sshll.u32 %s317_s14, 4  ;;  %s17_s13 = int_to_ptr.vmem [resolvable:$true] %s16_s13  ;;  %s343_s15 = int_to_ptr.vmem [resolvable:$true] %s25_s15 }
   0x3   :  { %s268_s18 = scalar_lea.hbm %s386_s0, 128 }
   0x4   :  { %p269_p0 = scmp.ne.s32.totalorder %s386_s0, %s268_s18  ;;  %p272_p1 = scmp.lt.u32.totalorder %s268_s18, %s386_s0 }
   0x6   :  { %p274_p2 = pnand %p272_p1, %p269_p0 }
   0x8   :  { %277 = shalt.err (!%p274_p2)
}
   0x9   :  { %s278_s23 = scalar_lea.vmem %s17_s13, 128  ;;  %p283_p4 = scmp.lt.s32.totalorder %s17_s13, %s17_s13 }
   0xa   :  { %p279_p3 = scmp.ne.s32.totalorder %s17_s13, %s278_s23  ;;  %p284_p5 = scmp.lt.s32.totalorder %s278_s23, %s278_s23 }
   0xc   :  { %p285_p6 = por %p284_p5, %p283_p4 }
   0xe   :  { %p286_p7 = pnand %p285_p6, %p279_p3 }
  0x10   :  { %289 = shalt.err (!%p286_p7)
}
  0x11   :  { %19 = dma.hbm_to_vmem [thread:$0]  %s386_s0, 128, %s17_s13, [#allocation3]  }
  0x12   :  { %s290_s28 = scalar_lea.hbm %s387_s1, 1536 }
  0x13   :  { %p291_p8 = scmp.ne.s32.totalorder %s387_s1, %s290_s28  ;;  %p294_p9 = scmp.lt.u32.totalorder %s290_s28, %s387_s1 }
  0x15   :  { %p296_p10 = pnand %p294_p9, %p291_p8 }
  0x17   :  { %299 = shalt.err (!%p296_p10)
}
  0x18   :  { %s300_s6 = scalar_lea.vmem %s343_s15, 1536  ;;  %p305_p12 = scmp.lt.s32.totalorder %s343_s15, %s343_s15 }
  0x19   :  { %p301_p11 = scmp.ne.s32.totalorder %s343_s15, %s300_s6  ;;  %p306_p13 = scmp.lt.s32.totalorder %s300_s6, %s300_s6 }
  0x1b   :  { %p307_p0 = por %p306_p13, %p305_p12 }
  0x1d   :  { %p308_p1 = pnand %p307_p0, %p301_p11 }
  0x1f   :  { %311 = shalt.err (!%p308_p1)
}
  0x20   :  { %s318_s0 = smov 384   ;;  %s319_s7 = smov 24  }
  0x21   :  { %31 = dma.hbm_to_vmem [thread:$0]  %s387_s1, 1536, %s343_s15, [#allocation5], %s318_s0, %s318_s0, %s319_s7  }
  0x22   :  { %312 = dma.done.wait [#allocation3], 128  }
  0x23   :  { %313 = vsyncadd [#allocation3], 4294967168 }
  0x24   :  { %314 = dma.done.wait [#allocation5], 1536  }
  0x25   :  { %315 = vsyncadd [#allocation5], 4294965760  ;;  %v320_v0 = vmov 0.0   ;;  %v321_v1 = vmov 0.0|0.0   ;;  %vm322_vm0 = vmmov 0   ;;  %v42_v2 = vld [vmem:[#allocation4 + $0x8] sm:$0xff]  ;;  %v55_v21 = vlaneseq }
  0x26   :  { %138 = vmatprep.mubr.f32.mxu0 %v320_v0  ;;  %253 = vmatprep.subr.bf16.mxu1 %v321_v1  ;;  %v45_v3 = vld [vmem:[#allocation4 + $0x20] sm:$0xff]  ;;  %v44_v6 = vld [vmem:[#allocation4 + $0x18] sm:$0xff]  ;;  %v51_v8 = vld [vmem:[#allocation4 + $0x50] sm:$0xff]  ;;  %vm70_vm1 = vcmask 261120  }
  0x27   :  { %242 = vmatprep.mubr.msk.f32.mxu1 %vm322_vm0, %v320_v0  ;;  %v41_v4 = vld [vmem:[#allocation4] sm:$0xff]  ;;  %v245_v5 = vpack.c.bf16 %v45_v3, %v42_v2  ;;  %v48_v7 = vld [vmem:[#allocation4 + $0x38] sm:$0xff]  ;;  %v47_v11 = vld [vmem:[#allocation4 + $0x30] sm:$0xff]  ;;  %v56_v22 = vshrl.u32 %v55_v21, 7 }
  0x28   :  { %v247_v9 = vpack.c.bf16 %v44_v6, %v41_v4  ;;  %v249_v10 = vpack.c.bf16 %v51_v8, %v48_v7  ;;  %v50_v12 = vld [vmem:[#allocation4 + $0x48] sm:$0xff]  ;;  %v43_v13 = vld [vmem:[#allocation4 + $0x10] sm:$0xff]  ;;  %v49_v15 = vld [vmem:[#allocation4 + $0x40] sm:$0xff] }
  0x29   :  { %246 = vmatprep.subr.bf16.mxu0 %v245_v5  ;;  %v46_v14 = vld [vmem:[#allocation4 + $0x28] sm:$0xff]  ;;  %v251_v16 = vpack.c.bf16 %v50_v12, %v47_v11  ;;  %v52_v18 = vld [vmem:[#allocation4 + $0x58] sm:$0xff]  ;;  %v57_v23 = vsub.s32 0, %v56_v22  ;;  %v61_v25 = vsub.s32 1, %v56_v22  ;;  %v65_v26 = vsub.s32 2, %v56_v22 }
  0x2a   :  { %248 = vmatpush1.bf16.msra.mxu0 %v247_v9  ;;  %v254_v17 = vpack.c.bf16 %v46_v14, %v43_v13  ;;  %v257_v19 = vpack.c.bf16 %v52_v18, %v49_v15  ;;  %v40_v20 = vld [vmem:[#allocation2] sm:$0xff] }
  0x2b   :  { %250 = vmatprep.subr.bf16.mxu0 %v249_v10  ;;  %v53_v24 = vld [vmem:[%s388_s2] sm:$0x7] }
  0x2c   :  { %255 = vmatpush3.bf16.msra.mxu1 %v254_v17  ;;  %v58_v27 = vrot.slane %v53_v24, %v57_v23  ;;  %v62_v28 = vrot.slane %v53_v24, %v61_v25  ;;  %v66_v29 = vrot.slane %v53_v24, %v65_v26 }
  0x2d   :  { %256 = vmatprep.subr.bf16.mxu1 %v321_v1 }
  0x2e   :  { %252 = vmatpush1.bf16.msra.mxu0 %v251_v16 }
  0x30   :  { %258 = vmatpush3.bf16.msra.mxu1 %v257_v19 }
  0x31   :  { %227 = vmatmul.mubr.msk.f32.vlgmr.msra.gmra.mrb[0].mxu0 %vm70_vm1, %v40_v20 }
  0x33   :  { %243 = vmatmul.mubr.msk.f32.vlgmr.msra.gmra.mrb[0].mxu1 %vm70_vm1, %v40_v20 }
 0x104   :  { %v140_v30 = vpop.f32.mrb[0].mxu0 }
 0x105   :  { %v141_v31 = vadd.f32 %v140_v30, %v58_v27  ;;  %v142_v32 = vpop.f32.mrb[1].mxu0 }
 0x106   :  { %v143_v33 = vadd.f32 %v142_v32, %v62_v28  ;;  %v211_v34 = vpop.f32.mrb[0].mxu1 }
 0x107   :  { %215 = vst [vmem:[%s389_s3] sm:$0xff] %v141_v31  ;;  %v212_v35 = vadd.f32 %v211_v34, %v66_v29  ;;  %v244_v36 = vpop.f32.mrb[1].mxu1 }
 0x108   :  { %v216_v37 = vmul.f32 1.442695, %v143_v33 }
 0x109   :  { %220 = vst [vmem:[%s389_s3 + $0x10] sm:$0xff] %v212_v35 }
 0x10a   :  { %266 = vpow2.f32 %v216_v37 }
 0x114   :  { %v267_v38 = vpop.eup %266 }
 0x115   :  { %v218_v39 = vadd.f32 0.0001, %v267_v38 }
 0x117   :  { %219 = vst [vmem:[%s389_s3 + $0x8] sm:$0xff] %v218_v39 }
 0x118   :  { %225 = vsyncpa [#allocation3], 1 }
 0x119   :  { %226 = vsyncpa [#allocation5], 1 }

</bundles_post_ra>
